<compile_context>
chip_gen: v7x
topology: tpu7x:2x2x1
jax: 0.10.0
libtpu: 0.0.40
codegen_flags: <defaults>
</compile_context>

<pallas_src>
import jax
import jax.numpy as jnp
from jax.experimental import pallas as pl
from jax.experimental.pallas import tpu as pltpu


def attention_kernel(gflat_ref, g_ref, w2_ref, b_ref, g_out_ref, ats_ref):
    # gflat_ref: (1, n)              flattened g (row-major), built in the wrapper
    # g_ref:     (n_window, feats)   natural layout for the second matmul
    # w2_ref:    (n, feats*feats)    pre-transposed Linear weight (W.T), prepared at init
    # b_ref:     (1, feats*feats)    Linear bias, prepared at init
    # g_out_ref: (n_window, feats)
    # ats_ref:   (feats, feats)
    feats = ats_ref.shape[0]

    # Linear layer: single MXU matmul (1, n) @ (n, feats*feats) -> (1, feats*feats)
    y = jnp.dot(gflat_ref[...], w2_ref[...], preferred_element_type=jnp.float32)
    # Bias + ReLU on the flat vector (VPU).
    y = jnp.maximum(y + b_ref[...], 0.0)

    # Unflatten (1, feats*feats) -> (feats, feats): static lane slices written
    # row-by-row into the output ref (cheap masked stores, no reshape/concat).
    for i in range(feats):  # static loop, feats is small
        ats_ref[pl.ds(i, 1), :] = y[:, i * feats:(i + 1) * feats].astype(ats_ref.dtype)

    # Second matmul: g (n_window, feats) @ ats (feats, feats)
    ats = ats_ref[...].astype(jnp.float32)
    g_out_ref[...] = jnp.dot(
        g_ref[...], ats, preferred_element_type=jnp.float32
    ).astype(g_out_ref.dtype)


def prepare_params(w_linear, b_linear):
    """Parameter re-layout, hoisted out of the per-call path (run once at init).

    PyTorch Linear weight (out=feats*feats, in=n) -> (n, feats*feats);
    bias (feats*feats,) -> (1, feats*feats).
    """
    w2 = jnp.asarray(w_linear).T
    b2 = jnp.asarray(b_linear).reshape(1, -1)
    return w2, b2


@jax.jit
def attention_forward(g, w2, b2):
    """g: (n_window, feats); w2: (n, feats*feats); b2: (1, feats*feats)."""
    n_window, feats = g.shape
    n = n_window * feats
    gflat = g.reshape(1, n)  # free row-major flatten under jit
    # NOTE: g and gflat are the same 160 bytes of data; the duplicate DMA is kept
    # deliberately because reconstructing one layout from the other in-kernel
    # (lane<->sublane shuffles) costs more than the second tiny copy.

    vmem = pl.BlockSpec(memory_space=pltpu.MemorySpace.VMEM)
    g_out, ats = pl.pallas_call(
        attention_kernel,
        out_shape=(
            jax.ShapeDtypeStruct((n_window, feats), jnp.float32),
            jax.ShapeDtypeStruct((feats, feats), jnp.float32),
        ),
        in_specs=[vmem, vmem, vmem, vmem],
        out_specs=(vmem, vmem),
    )(gflat, g, w2, b2)
    return g_out, ats


if __name__ == "__main__":
    feats = 8
    n_window = 5
    n = feats * n_window

    key = jax.random.PRNGKey(0)
    k_w, k_b, k_g = jax.random.split(key, 3)

    # Deterministic PyTorch-Linear-style init: U(-1/sqrt(n), 1/sqrt(n))
    bound = 1.0 / (n ** 0.5)
    w_linear = jax.random.uniform(k_w, (feats * feats, n), jnp.float32, -bound, bound)
    b_linear = jax.random.uniform(k_b, (feats * feats,), jnp.float32, -bound, bound)
    g = jax.random.normal(k_g, (n_window, feats), jnp.float32)

    # Parameter re-layout done once (init time), outside the hot path.
    w2, b2 = prepare_params(w_linear, b_linear)

    g_out, ats = attention_forward(g, w2, b2)
    jax.block_until_ready((g_out, ats))

    # Pure-JAX reference (same semantics as the PyTorch forward)
    y_ref = jnp.maximum(g.reshape(1, -1) @ w_linear.T + b_linear[None, :], 0.0)
    ats_expected = y_ref.reshape(feats, feats)
    g_out_expected = g @ ats_expected

    assert jnp.allclose(ats, ats_expected, rtol=1e-3, atol=1e-3)
    assert jnp.allclose(g_out, g_out_expected, rtol=1e-3, atol=1e-3)
    print("KERNEL_OK")
</pallas_src>

<mosaic_0001>
module attributes {stable_mosaic.version = 11 : i64} {
  func.func @attention_kernel(%arg0: memref<1x40xf32, #tpu.memory_space<vmem>>, %arg1: memref<5x8xf32, #tpu.memory_space<vmem>>, %arg2: memref<40x64xf32, #tpu.memory_space<vmem>>, %arg3: memref<1x64xf32, #tpu.memory_space<vmem>>, %arg4: memref<5x8xf32, #tpu.memory_space<vmem>>, %arg5: memref<8x8xf32, #tpu.memory_space<vmem>>) attributes {dimension_semantics = [], scalar_prefetch = 0 : i64, scratch_operands = 0 : i64, tpu.core_type = #tpu.core_type<tc>} {
    %c0 = arith.constant 0 : index
    %c0_0 = arith.constant 0 : index
    %0 = vector.load %arg0[%c0, %c0_0] : memref<1x40xf32, #tpu.memory_space<vmem>>, vector<1x40xf32>
    %c0_1 = arith.constant 0 : index
    %c0_2 = arith.constant 0 : index
    %1 = vector.load %arg2[%c0_1, %c0_2] : memref<40x64xf32, #tpu.memory_space<vmem>>, vector<40x64xf32>
    %cst = arith.constant dense<0.000000e+00> : vector<1x64xf32>
    %2 = tpu.matmul %0, %1, %cst {dimension_numbers = #tpu.dot_dimension_numbers<[1], [0], [0], [1], [0, 0, 1, 1], [], []>} : vector<1x40xf32>, vector<40x64xf32>, vector<1x64xf32> -> vector<1x64xf32>
    %c0_3 = arith.constant 0 : index
    %c0_4 = arith.constant 0 : index
    %3 = vector.load %arg3[%c0_3, %c0_4] : memref<1x64xf32, #tpu.memory_space<vmem>>, vector<1x64xf32>
    %4 = arith.addf %2, %3 : vector<1x64xf32>
    %cst_5 = arith.constant 0.000000e+00 : f32
    %5 = vector.broadcast %cst_5 : f32 to vector<1x64xf32>
    %6 = arith.maximumf %4, %5 : vector<1x64xf32>
    %7 = vector.extract_strided_slice %6 {offsets = [0, 0], sizes = [1, 8], strides = [1, 1]} : vector<1x64xf32> to vector<1x8xf32>
    %c0_6 = arith.constant 0 : index
    %c0_7 = arith.constant 0 : index
    %8 = vector.load %arg5[%c0_6, %c0_7] : memref<8x8xf32, #tpu.memory_space<vmem>>, vector<1x8xf32>
    tpu.vector_store %arg5[%c0_6, %c0_7], %7 {strides = array<i32>} : memref<8x8xf32, #tpu.memory_space<vmem>>, vector<1x8xf32>,
    %9 = vector.extract_strided_slice %6 {offsets = [0, 8], sizes = [1, 8], strides = [1, 1]} : vector<1x64xf32> to vector<1x8xf32>
    %c1 = arith.constant 1 : index
    %c0_8 = arith.constant 0 : index
    %10 = vector.load %arg5[%c1, %c0_8] : memref<8x8xf32, #tpu.memory_space<vmem>>, vector<1x8xf32>
    tpu.vector_store %arg5[%c1, %c0_8], %9 {strides = array<i32>} : memref<8x8xf32, #tpu.memory_space<vmem>>, vector<1x8xf32>,
    %11 = vector.extract_strided_slice %6 {offsets = [0, 16], sizes = [1, 8], strides = [1, 1]} : vector<1x64xf32> to vector<1x8xf32>
    %c2 = arith.constant 2 : index
    %c0_9 = arith.constant 0 : index
    %12 = vector.load %arg5[%c2, %c0_9] : memref<8x8xf32, #tpu.memory_space<vmem>>, vector<1x8xf32>
    tpu.vector_store %arg5[%c2, %c0_9], %11 {strides = array<i32>} : memref<8x8xf32, #tpu.memory_space<vmem>>, vector<1x8xf32>,
    %13 = vector.extract_strided_slice %6 {offsets = [0, 24], sizes = [1, 8], strides = [1, 1]} : vector<1x64xf32> to vector<1x8xf32>
    %c3 = arith.constant 3 : index
    %c0_10 = arith.constant 0 : index
    %14 = vector.load %arg5[%c3, %c0_10] : memref<8x8xf32, #tpu.memory_space<vmem>>, vector<1x8xf32>
    tpu.vector_store %arg5[%c3, %c0_10], %13 {strides = array<i32>} : memref<8x8xf32, #tpu.memory_space<vmem>>, vector<1x8xf32>,
    %15 = vector.extract_strided_slice %6 {offsets = [0, 32], sizes = [1, 8], strides = [1, 1]} : vector<1x64xf32> to vector<1x8xf32>
    %c4 = arith.constant 4 : index
    %c0_11 = arith.constant 0 : index
    %16 = vector.load %arg5[%c4, %c0_11] : memref<8x8xf32, #tpu.memory_space<vmem>>, vector<1x8xf32>
    tpu.vector_store %arg5[%c4, %c0_11], %15 {strides = array<i32>} : memref<8x8xf32, #tpu.memory_space<vmem>>, vector<1x8xf32>,
    %17 = vector.extract_strided_slice %6 {offsets = [0, 40], sizes = [1, 8], strides = [1, 1]} : vector<1x64xf32> to vector<1x8xf32>
    %c5 = arith.constant 5 : index
    %c0_12 = arith.constant 0 : index
    %18 = vector.load %arg5[%c5, %c0_12] : memref<8x8xf32, #tpu.memory_space<vmem>>, vector<1x8xf32>
    tpu.vector_store %arg5[%c5, %c0_12], %17 {strides = array<i32>} : memref<8x8xf32, #tpu.memory_space<vmem>>, vector<1x8xf32>,
    %19 = vector.extract_strided_slice %6 {offsets = [0, 48], sizes = [1, 8], strides = [1, 1]} : vector<1x64xf32> to vector<1x8xf32>
    %c6 = arith.constant 6 : index
    %c0_13 = arith.constant 0 : index
    %20 = vector.load %arg5[%c6, %c0_13] : memref<8x8xf32, #tpu.memory_space<vmem>>, vector<1x8xf32>
    tpu.vector_store %arg5[%c6, %c0_13], %19 {strides = array<i32>} : memref<8x8xf32, #tpu.memory_space<vmem>>, vector<1x8xf32>,
    %21 = vector.extract_strided_slice %6 {offsets = [0, 56], sizes = [1, 8], strides = [1, 1]} : vector<1x64xf32> to vector<1x8xf32>
    %c7 = arith.constant 7 : index
    %c0_14 = arith.constant 0 : index
    %22 = vector.load %arg5[%c7, %c0_14] : memref<8x8xf32, #tpu.memory_space<vmem>>, vector<1x8xf32>
    tpu.vector_store %arg5[%c7, %c0_14], %21 {strides = array<i32>} : memref<8x8xf32, #tpu.memory_space<vmem>>, vector<1x8xf32>,
    %c0_15 = arith.constant 0 : index
    %c0_16 = arith.constant 0 : index
    %23 = vector.load %arg5[%c0_15, %c0_16] : memref<8x8xf32, #tpu.memory_space<vmem>>, vector<8x8xf32>
    %c0_17 = arith.constant 0 : index
    %c0_18 = arith.constant 0 : index
    %24 = vector.load %arg1[%c0_17, %c0_18] : memref<5x8xf32, #tpu.memory_space<vmem>>, vector<5x8xf32>
    %cst_19 = arith.constant dense<0.000000e+00> : vector<5x8xf32>
    %25 = tpu.matmul %24, %23, %cst_19 {dimension_numbers = #tpu.dot_dimension_numbers<[1], [0], [0], [1], [0, 0, 1, 1], [], []>} : vector<5x8xf32>, vector<8x8xf32>, vector<5x8xf32> -> vector<5x8xf32>
    %c0_20 = arith.constant 0 : index
    %c0_21 = arith.constant 0 : index
    %26 = vector.load %arg4[%c0_20, %c0_21] : memref<5x8xf32, #tpu.memory_space<vmem>>, vector<5x8xf32>
    tpu.vector_store %arg4[%c0_20, %c0_21], %25 {strides = array<i32>} : memref<5x8xf32, #tpu.memory_space<vmem>>, vector<5x8xf32>,
    return
  }
}

</mosaic_0001>

<bundles_post_ra>
// kernel: attention_forward.1
= control target key start
LH: loop header
LB: loop body
LE: loop exit
PB: predicated region body
PF: predicated region fallthrough
CT: control target
= control target key end

     0   :  { %11 = vsyncpa [#allocation3], 0  ;;  %s474_s0 = inlined_call_operand.vmem [shape: f32[1,40], index: 0, kind: input, shape index: {}]   ;;  %s475_s1 = inlined_call_operand.vmem [shape: f32[5,8], index: 1, kind: input, shape index: {}]   ;;  %s476_s2 = inlined_call_operand.hbm [shape: f32[40,64], index: 2, kind: input, shape index: {}]   ;;  %s477_s3 = inlined_call_operand.vmem [shape: f32[1,64], index: 3, kind: input, shape index: {}]   ;;  %s478_s4 = inlined_call_operand.hbm [shape: f32[5,8], index: 4, kind: output, shape index: {0}]   ;;  %s479_s5 = inlined_call_operand.hbm [shape: f32[8,8], index: 5, kind: output, shape index: {1}]  }
   0x1   :  { %12 = vsyncpa [#allocation4], 0 }
   0x2   :  { %13 = vsyncpa [#allocation7], 0  ;;  %s376_s18 = smov [#allocation2]   ;;  %s304_s22 = scalar_lea.hbm %s476_s2, 640 }
   0x3   :  { %s23_s19 = sshll.u32 %s376_s18, 4  ;;  %p305_p0 = scmp.ne.s32.totalorder %s476_s2, %s304_s22  ;;  %s24_s19 = int_to_ptr.vmem [resolvable:$true] %s23_s19 }
   0x4   :  { %p308_p1 = scmp.lt.u32.totalorder %s304_s22, %s476_s2 }
   0x6   :  { %p310_p2 = pnand %p308_p1, %p305_p0 }
   0x8   :  { %313 = shalt.err (!%p310_p2)
}
   0x9   :  { %s314_s27 = scalar_lea.vmem %s24_s19, 640  ;;  %p319_p4 = scmp.lt.s32.totalorder %s24_s19, %s24_s19 }
   0xa   :  { %p315_p3 = scmp.ne.s32.totalorder %s24_s19, %s314_s27  ;;  %p320_p5 = scmp.lt.s32.totalorder %s314_s27, %s314_s27 }
   0xc   :  { %p321_p6 = por %p320_p5, %p319_p4 }
   0xe   :  { %p322_p7 = pnand %p321_p6, %p315_p3 }
  0x10   :  { %325 = shalt.err (!%p322_p7)
}
  0x11   :  { %s377_s28 = smov 128   ;;  %s378_s29 = smov 8  }
  0x12   :  { %29 = dma.hbm_to_vmem [thread:$0]  %s476_s2, 640, %s24_s19, [#allocation3], %s377_s28, %s377_s28, %s378_s29  }
  0x13   :  { %370 = dma.done.wait [#allocation3], 640  }
  0x14   :  { %371 = vsyncadd [#allocation3], 4294966656  ;;  %v379_v0 = vmov 0.0|0.0   ;;  %vm380_vm0 = vmmov 0   ;;  %v381_v1 = vmov 0.0   ;;  %v36_v2 = vld [vmem:[#allocation2] sm:$0xff] }
  0x15   :  { %283 = vmatprep.subr.bf16.mxu0 %v379_v0  ;;  %275 = vmatprep.mubr.msk.f32.mxu0 %vm380_vm0, %v381_v1  ;;  %v37_v3 = vld [vmem:[#allocation2 + $0x8] sm:$0xff]  ;;  %v38_v4 = vld [vmem:[#allocation2 + $0x10] sm:$0xff]  ;;  %v39_v6 = vld [vmem:[#allocation2 + $0x18] sm:$0xff]  ;;  %vm42_vm1 = vcmask 326656   ;;  %vm117_vm2 = vcmask 57344   ;;  %s382_s10 = smov 104  }
  0x16   :  { %278 = vmatprep.subr.mxu1 %v381_v1  ;;  %280 = vmatprep.mubr.msk.f32.mxu1 %vm380_vm0, %v381_v1  ;;  %v284_v5 = vpack.c.bf16 %v37_v3, %v36_v2  ;;  %v287_v7 = vpack.c.bf16 %v39_v6, %v38_v4  ;;  %v40_v8 = vld [vmem:[#allocation2 + $0x20] sm:$0xff]  ;;  %s383_s11 = smov 120   ;;  %s384_s12 = smov 96   ;;  %vm150_vm3 = vcmask 64512  }
  0x17   :  { %v35_v9 = vld [vmem:[%s474_s0] sm:$0x1]  ;;  %s385_s0 = smov 112   ;;  %s386_s13 = smov 80  }
  0x18   :  { %285 = vmatpush3.bf16.msra.mxu0 %v284_v5  ;;  %v41_v10 = vld [vmem:[%s477_s3] sm:$0x1]  ;;  %s387_s14 = smov 88   ;;  %s388_s3 = smov 72  }
  0x19   :  { %286 = vmatprep.subr.bf16.mxu0 %v379_v0  ;;  %v149_v22 = vld [vmem:[%s475_s1] sm:$0x1f]  ;;  %s389_s17 = smov [#allocation6]  }
  0x1a   :  { %s242_s18 = sshll.u32 %s389_s17, 4  ;;  %s243_s18 = int_to_ptr.vmem [resolvable:$true] %s242_s18 }
  0x1b   :  { %s326_s19 = scalar_lea.vmem %s243_s18, 128  ;;  %p331_p9 = scmp.lt.s32.totalorder %s243_s18, %s243_s18 }
  0x1c   :  { %288 = vmatpush3.bf16.msra.mxu0 %v287_v7  ;;  %p327_p8 = scmp.ne.s32.totalorder %s243_s18, %s326_s19  ;;  %p332_p10 = scmp.lt.s32.totalorder %s326_s19, %s326_s19 }
  0x1d   :  { %273 = vmatprep.subr.mxu0 %v381_v1 }
  0x1e   :  { %p333_p11 = por %p332_p10, %p331_p9 }
  0x20   :  { %274 = vmatpush3.msra.mxu0 %v40_v8  ;;  %p334_p12 = pnand %p333_p11, %p327_p8 }
  0x21   :  { %276 = vmatmul.mubr.msk.f32.vlgmr.msra.gmra.mrb[0].mxu0 %vm42_vm1, %v35_v9 }
  0xf4   :  { %v112_v11 = vpop.f32.mrb[0].mxu0 }
  0xf5   :  { %v113_v12 = vadd.f32 %v112_v11, %v41_v10  ;;  %v277_v13 = vpop.f32.mrb[1].mxu0 }
  0xf7   :  { %v116_v14 = vmax.f32 %v113_v12, 0.0 }
  0xf9   :  { %128 = vrot.lane.b32.xlu1 %v116_v14, %s382_s10  ;;  %120 = vrot.lane.b32.xlu0 %v116_v14, %s383_s11  ;;  %118 = vst.msk [vmem:[#allocation6] sm:$0x1] %vm117_vm2, %v116_v14 }
  0xfd   :  { %132 = vrot.lane.b32.xlu1 %v116_v14, %s384_s12  ;;  %124 = vrot.lane.b32.xlu0 %v116_v14, %s385_s0 }
 0x101   :  { %140 = vrot.lane.b32.xlu1 %v116_v14, %s386_s13  ;;  %136 = vrot.lane.b32.xlu0 %v116_v14, %s387_s14 }
 0x105   :  { %144 = vrot.lane.b32.xlu0 %v116_v14, %s388_s3 }
 0x16b   :  { %v129_v15 = vpop.permute.xlu1 %128  ;;  %v121_v16 = vpop.permute.xlu0 %120 }
 0x16c   :  { %131 = vst.msk [vmem:[#allocation6 + $0x3] sm:$0x1] %vm117_vm2, %v129_v15  ;;  %123 = vst.msk [vmem:[#allocation6 + $0x1] sm:$0x1] %vm117_vm2, %v121_v16 }
 0x16f   :  { %v133_v17 = vpop.permute.xlu1 %132  ;;  %v125_v18 = vpop.permute.xlu0 %124 }
 0x170   :  { %135 = vst.msk [vmem:[#allocation6 + $0x4] sm:$0x1] %vm117_vm2, %v133_v17  ;;  %127 = vst.msk [vmem:[#allocation6 + $0x2] sm:$0x1] %vm117_vm2, %v125_v18 }
 0x173   :  { %v141_v19 = vpop.permute.xlu1 %140  ;;  %v137_v20 = vpop.permute.xlu0 %136 }
 0x174   :  { %143 = vst.msk [vmem:[#allocation6 + $0x6] sm:$0x1] %vm117_vm2, %v141_v19  ;;  %139 = vst.msk [vmem:[#allocation6 + $0x5] sm:$0x1] %vm117_vm2, %v137_v20 }
 0x177   :  { %v145_v21 = vpop.permute.xlu0 %144 }
 0x178   :  { %147 = vst.msk [vmem:[#allocation6 + $0x7] sm:$0x1] %vm117_vm2, %v145_v21 }
 0x17f   :  { %v148_v23 = vld [vmem:[#allocation6] sm:$0xff] }
 0x180   :  { %279 = vmatpush3.msra.mxu1 %v148_v23 }
 0x181   :  { %281 = vmatmul.mubr.msk.f32.vlgmr.msra.gmra.mrb[0].mxu1 %vm150_vm3, %v149_v22 }
 0x182   :  { %337 = shalt.err (!%p334_p12)
}
 0x183   :  { %s338_s22 = scalar_lea.hbm %s479_s5, 128 }
 0x184   :  { %p339_p13 = scmp.ne.s32.totalorder %s479_s5, %s338_s22  ;;  %p342_p0 = scmp.lt.u32.totalorder %s338_s22, %s479_s5 }
 0x186   :  { %p344_p1 = pnand %p342_p0, %p339_p13 }
 0x188   :  { %347 = shalt.err (!%p344_p1)
}
 0x189   :  { %245 = dma.vmem_to_hbm [thread:$0]  %s243_s18, 128, %s479_s5, [#allocation7]   ;;  %vm224_vm4 = vcmask 61440  }
 0x18a   :  { %s390_s28 = smov [#allocation5]  }
 0x18b   :  { %s232_s29 = sshll.u32 %s390_s28, 4  ;;  %s233_s29 = int_to_ptr.vmem [resolvable:$true] %s232_s29 }
 0x18c   :  { %s348_s30 = scalar_lea.vmem %s233_s29, 128  ;;  %p353_p3 = scmp.lt.s32.totalorder %s233_s29, %s233_s29 }
 0x18d   :  { %p349_p2 = scmp.ne.s32.totalorder %s233_s29, %s348_s30  ;;  %p354_p4 = scmp.lt.s32.totalorder %s348_s30, %s348_s30 }
 0x18f   :  { %p355_p5 = por %p354_p4, %p353_p3 }
 0x191   :  { %p356_p6 = pnand %p355_p5, %p349_p2 }
 0x254   :  { %v220_v24 = vpop.f32.mrb[0].mxu1 }
 0x255   :  { %v282_v25 = vpop.f32.mrb[1].mxu1  ;;  %225 = vst.msk [vmem:[#allocation5] sm:$0x1f] %vm224_vm4, %v220_v24 }
 0x256   :  { %359 = shalt.err (!%p356_p6)
}
 0x257   :  { %s360_s7 = scalar_lea.hbm %s478_s4, 128 }
 0x258   :  { %p361_p7 = scmp.ne.s32.totalorder %s478_s4, %s360_s7  ;;  %p364_p8 = scmp.lt.u32.totalorder %s360_s7, %s478_s4 }
 0x25a   :  { %p366_p9 = pnand %p364_p8, %p361_p7 }
 0x25c   :  { %369 = shalt.err (!%p366_p9)
}
 0x25d   :  { %235 = dma.vmem_to_hbm [thread:$0]  %s233_s29, 128, %s478_s4, [#allocation4]  }
 0x25e   :  { %372 = dma.done.wait [#allocation4], 128  }
 0x25f   :  { %373 = vsyncadd [#allocation4], 4294967168 }
 0x260   :  { %374 = dma.done.wait [#allocation7], 128  }
 0x261   :  { %375 = vsyncadd [#allocation7], 4294967168 }
 0x262   :  { %252 = vsyncpa [#allocation3], 1 }
 0x263   :  { %253 = vsyncpa [#allocation4], 1 }
 0x264   :  { %254 = vsyncpa [#allocation7], 1 }

</bundles_post_ra>
